<compile_context>
chip_gen: v5e
topology: v5e:2x2
jax: 0.10.0
libtpu: 0.0.40
codegen_flags: <defaults>
</compile_context>

<pallas_src>
import functools

import jax
import jax.numpy as jnp
from jax import lax
from jax.experimental import pallas as pl
from jax.experimental.pallas import tpu as pltpu


def _ceil_to(n, m):
    return ((n + m - 1) // m) * m


def _leaky_relu(x, slope=0.1):   # module uses nn.LeakyReLU(0.1)
    return jnp.where(x >= 0, x, slope * x)


def _tpu_kind():
    try:
        return jax.devices()[0].device_kind.lower()
    except Exception:
        return ""


def _vmem_capacity_bytes():
    try:
        cap = int(pltpu.get_tpu_info().vmem_capacity_bytes)
        if cap > 0:
            return cap
    except Exception:
        pass
    # fallback: v7x has 64 MiB per TensorCore, older parts 128 MiB.
    return (64 << 20) if "v7" in _tpu_kind() else (128 << 20)


def _default_batch_tile():
    # 128-wide MXU parts (v2-v5): M=128 already fills the array.
    # 256-wide MXU parts (v6e / v7x): 256 rows per push ~doubles utilization.
    kind = _tpu_kind()
    if any(t in kind for t in ("v2", "v3", "v4", "v5")):
        return 128
    return 256


# ---------------------------------------------------------------------------
# One-shot (hoisted) kernel: transfer^T computed directly in (Din, Dz) layout.
#   transfer^T = fc2_w @ leaky(fc1_w @ lin_w^T + fc1_b[:,None]) + fc2_b[:,None]
# bf16 MXU operands, f32 accumulation; emitted as bf16 (it only feeds the MXU).
# ---------------------------------------------------------------------------
def transfer_t_kernel(lin_wt_ref, fc1_w_ref, fc1_b_ref, fc2_w_ref, fc2_b_ref,
                      out_ref):
    t = jnp.dot(fc1_w_ref[...].astype(jnp.bfloat16),
                lin_wt_ref[...].astype(jnp.bfloat16),
                preferred_element_type=jnp.float32) + fc1_b_ref[...]
    t = _leaky_relu(t)                                                 # (Dz, Dz)
    tt = jnp.dot(fc2_w_ref[...].astype(jnp.bfloat16), t.astype(jnp.bfloat16),
                 preferred_element_type=jnp.float32) + fc2_b_ref[...]  # (Din, Dz)
    out_ref[...] = tt.astype(out_ref.dtype)


def compute_transfer_t(lin_w, fc1_w, fc1_b, fc2_w, fc2_b):
    dz, din = lin_w.shape
    vmem = pl.BlockSpec(memory_space=pltpu.MemorySpace.VMEM)
    return pl.pallas_call(
        transfer_t_kernel,
        out_shape=jax.ShapeDtypeStruct((din, dz), jnp.bfloat16),
        in_specs=[vmem] * 5,
        out_specs=vmem,
    )(lin_w.T.astype(jnp.float32),
      fc1_w.astype(jnp.float32), fc1_b.reshape(-1, 1).astype(jnp.float32),
      fc2_w.astype(jnp.float32), fc2_b.reshape(-1, 1).astype(jnp.float32))


# ---------------------------------------------------------------------------
# Hot-path kernel.  Grid = (batch_tiles, class_tiles); class axis innermost.
#   c == 0 : one fused MXU pass of x through [fc3.W^T | transfer^T], residual
#            add, L2-normalize * temperature  -> bf16 scratch h.
#   every c: scores tile = h @ zs_w[:, c-tile] (+ cls_bias).
# ---------------------------------------------------------------------------
def wt_zsc_kernel(x_ref, wcat_ref, fc3_b_ref, fc4_wt_ref, fc4_b_ref, zs_ref,
                  cls_b_ref, out_ref, h_ref, *, hdim, norm_temperature,
                  normalize):
    @pl.when(pl.program_id(1) == 0)
    def _compute_h():
        x = x_ref[...].astype(jnp.bfloat16)                     # (TB, Din)
        # single pass of x through the MXU: fused [fc3.W^T | transfer^T]
        y = jnp.dot(x, wcat_ref[...],
                    preferred_element_type=jnp.float32)         # (TB, 1024+Dz)
        r = _leaky_relu(y[:, :hdim] + fc3_b_ref[...])           # (TB, 1024) f32
        h = y[:, hdim:] + fc4_b_ref[...] + jnp.dot(
            r.astype(jnp.bfloat16), fc4_wt_ref[...],
            preferred_element_type=jnp.float32)                 # (TB, Dz) f32
        if normalize:
            # norm_temperature * L2-normalize(dim=1), eps=1e-12 (1e-24 == eps^2)
            ss = jnp.sum(h * h, axis=1, keepdims=True)
            h = h * (norm_temperature * lax.rsqrt(jnp.maximum(ss, 1e-24)))
        h_ref[...] = h.astype(h_ref.dtype)

    scores = jnp.dot(h_ref[...], zs_ref[...],
                     preferred_element_type=jnp.float32) + cls_b_ref[...]
    out_ref[...] = scores.astype(out_ref.dtype)


# ---------------------------------------------------------------------------
# One-time parameter preparation (all layout plumbing lives here).
# ---------------------------------------------------------------------------
def prepare_params(params, *, use_bias=0.0, class_tile=None):
    (lin_w, fc1_w, fc1_b, fc2_w, fc2_b,
     fc3_w, fc3_b, fc4_w, fc4_b, zs_w) = params

    transfer_t = compute_transfer_t(lin_w, fc1_w, fc1_b, fc2_w, fc2_b)  # (Din, Dz)
    # fused x-weight: one MXU pass computes both fc3(x) and x @ transfer^T.
    w_cat = jnp.concatenate([fc3_w.T.astype(jnp.bfloat16), transfer_t],
                            axis=1)                                     # (Din, 1024+Dz)

    dz, c_out = zs_w.shape
    # class tile: multiple of 128; single tile for modest class counts, 2048 for
    # very large ones (bounds zs_w + out-tile VMEM, critical on v7x's 64 MiB).
    if class_tile is None:
        class_tile = _ceil_to(c_out, 128) if c_out <= 4096 else 2048
    tc = max(128, 128 * (int(class_tile) // 128))
    c_pad = _ceil_to(c_out, tc)
    zs_pad = jnp.pad(zs_w, ((0, 0), (0, c_pad - c_out))).astype(jnp.bfloat16)

    cls_bias = jnp.full((1, 1), float(use_bias) if use_bias < 0 else 0.0,
                        jnp.float32)
    return dict(
        w_cat=w_cat,
        fc3_b=fc3_b.reshape(1, -1).astype(jnp.float32),   # (1, 1024)
        fc4_wt=fc4_w.T.astype(jnp.bfloat16),              # (1024, Dz)
        fc4_b=fc4_b.reshape(1, -1).astype(jnp.float32),   # (1, Dz)
        zs_w=zs_pad,                                      # (Dz, Cpad) bf16
        cls_bias=cls_bias,                                # (1, 1) f32
        num_out=c_out, class_tile=tc,
        hdim=int(fc3_w.shape[0]), dz=int(dz))


# ---------------------------------------------------------------------------
# Hot-path wrapper.
# ---------------------------------------------------------------------------
def weight_transfer_zero_shot_classifier(x, prepared, classifier=None, *,
                                         norm_temperature=50.0,
                                         norm_weight=True,
                                         tb=None,
                                         out_dtype=jnp.float32):
    w_cat, fc3_b = prepared["w_cat"], prepared["fc3_b"]
    fc4_wt, fc4_b = prepared["fc4_wt"], prepared["fc4_b"]
    cls_bias = prepared["cls_bias"]
    hdim, dz = prepared["hdim"], prepared["dz"]

    if classifier is None:
        zs_w = prepared["zs_w"]
        num_out = prepared["num_out"]
        tc = prepared["class_tile"]
    else:
        # runtime classifier (C', D): permute -> (D, C'), L2-normalize columns.
        zsc = classifier.T.astype(jnp.float32)
        if norm_weight:
            zsc = zsc / jnp.maximum(
                jnp.linalg.norm(zsc, axis=0, keepdims=True), 1e-12)
        num_out = zsc.shape[1]
        tc = min(prepared["class_tile"], _ceil_to(num_out, 128))
        c_p = _ceil_to(num_out, tc)
        zs_w = jnp.pad(zsc, ((0, 0), (0, c_p - num_out))).astype(jnp.bfloat16)

    b, din = x.shape
    hcat = w_cat.shape[1]
    c_pad = zs_w.shape[1]
    nc = c_pad // tc

    # --- batch tiling: generation-aware, multiple of 16 (native bf16 tile) ---
    kind = _tpu_kind()
    if tb is None:
        tb = _default_batch_tile()
    tb = max(16, 16 * (int(tb) // 16))
    b16 = _ceil_to(b, 16)
    tb = min(tb, b16)
    # v7x has 2 TensorCores: make sure the parallel batch axis has >= 2 programs.
    if "v7" in kind and b16 > 16 and (-(-b16 // tb)) < 2:
        tb = min(tb, _ceil_to(-(-b16 // 2), 16))
    b_pad = _ceil_to(b, tb)
    xb = x if b_pad == b else jnp.pad(x, ((0, b_pad - b), (0, 0)))
    nb = b_pad // tb

    x_bytes = xb.dtype.itemsize
    out_bytes = jnp.dtype(out_dtype).itemsize

    flops = 2 * b_pad * (din * hcat + hdim * dz + dz * c_pad)
    bytes_accessed = int(b_pad * din * x_bytes + w_cat.size * 2 +
                         fc4_wt.size * 2 + (fc3_b.size + fc4_b.size + 1) * 4 +
                         zs_w.size * 2 + b_pad * c_pad * out_bytes)
    cost = pl.CostEstimate(flops=int(flops), transcendentals=int(b_pad),
                           bytes_accessed=bytes_accessed)

    # VMEM budget: resident weights (count double-buffered as the worst case),
    # double-buffered x / zs / out tiles, f32 intermediates, + headroom;
    # capped at 75% of the physical per-core VMEM (generation aware).
    weight_bytes = (w_cat.size + fc4_wt.size) * 2 + \
                   (fc3_b.size + fc4_b.size + 1) * 4
    tile_bytes = 2 * tb * din * x_bytes + 2 * dz * tc * 2 + 2 * tb * tc * out_bytes
    interm_bytes = tb * (hcat + hdim + dz) * 4 + tb * dz * 2
    vmem_limit = 2 * weight_bytes + tile_bytes + interm_bytes + (8 << 20)
    vmem_limit = max(vmem_limit, 32 << 20)
    vmem_limit = min(vmem_limit, int(0.75 * _vmem_capacity_bytes()))

    kern = functools.partial(wt_zsc_kernel, hdim=hdim,
                             norm_temperature=float(norm_temperature),
                             normalize=bool(norm_weight))

    def _build(single_buffer_weights):
        def wspec(shape, imap):
            # constant-index resident weights don't need two VMEM copies.
            if single_buffer_weights:
                return pl.BlockSpec(shape, imap, pipeline_mode=pl.Buffered(1))
            return pl.BlockSpec(shape, imap)

        return pl.pallas_call(
            kern,
            out_shape=jax.ShapeDtypeStruct((b_pad, c_pad), out_dtype),
            grid=(nb, nc),
            in_specs=[
                pl.BlockSpec((tb, din), lambda i, c: (i, 0)),   # x (batch tiled)
                wspec((din, hcat), lambda i, c: (0, 0)),        # [fc3.W^T | transfer^T]
                wspec((1, hdim), lambda i, c: (0, 0)),          # fc3 bias
                wspec((hdim, dz), lambda i, c: (0, 0)),         # fc4.W^T
                wspec((1, dz), lambda i, c: (0, 0)),            # fc4 bias
                pl.BlockSpec((dz, tc), lambda i, c: (0, c)),    # zs_weight (class tiled)
                wspec((1, 1), lambda i, c: (0, 0)),             # cls_bias scalar
            ],
            out_specs=pl.BlockSpec((tb, tc), lambda i, c: (i, c)),
            scratch_shapes=[pltpu.VMEM((tb, dz), jnp.bfloat16)],  # normalized h
            compiler_params=pltpu.CompilerParams(
                dimension_semantics=("parallel", "arbitrary"),
                vmem_limit_bytes=int(vmem_limit)),
            cost_estimate=cost,
        )

    args = (xb, w_cat, fc3_b, fc4_wt, fc4_b, zs_w, cls_bias)
    try:
        out_pad = _build(True)(*args)
    except Exception:
        # pipeline_mode=pl.Buffered(1) not supported on this jax version:
        # fall back to default (double-buffered) weight specs.
        out_pad = _build(False)(*args)

    return out_pad[:b, :num_out]


# ---------------------------------------------------------------------------
# Synthetic params + f32 reference (mirrors the PyTorch forward).
# ---------------------------------------------------------------------------
def init_params(key, input_size, zs_weight_dim, num_classes):
    ks = jax.random.split(key, 10)

    def w(k, shape, scale=0.02):
        return scale * jax.random.normal(k, shape, jnp.float32)

    lin_w = w(ks[0], (zs_weight_dim, input_size))      # self.linear.weight
    fc1_w = w(ks[1], (zs_weight_dim, input_size))
    fc1_b = w(ks[2], (zs_weight_dim,))
    fc2_w = w(ks[3], (input_size, zs_weight_dim))
    fc2_b = w(ks[4], (input_size,))
    fc3_w = w(ks[5], (1024, input_size))
    fc3_b = w(ks[6], (1024,))
    fc4_w = w(ks[7], (zs_weight_dim, 1024))
    fc4_b = w(ks[8], (zs_weight_dim,))

    # zs_weight ('rand' path): N(0, 0.01), append zero column, L2-normalize dim 0
    zs = 0.01 * jax.random.normal(ks[9], (zs_weight_dim, num_classes), jnp.float32)
    zs = jnp.concatenate([zs, jnp.zeros((zs_weight_dim, 1), jnp.float32)], axis=1)
    zs = zs / jnp.maximum(jnp.linalg.norm(zs, axis=0, keepdims=True), 1e-12)

    return (lin_w, fc1_w, fc1_b, fc2_w, fc2_b, fc3_w, fc3_b, fc4_w, fc4_b, zs)


def _reference(x, params, norm_temperature=50.0, use_bias=0.0, classifier=None,
               norm_weight=True):
    (lin_w, fc1_w, fc1_b, fc2_w, fc2_b,
     fc3_w, fc3_b, fc4_w, fc4_b, zs_w) = params
    leaky = lambda v: jnp.where(v >= 0, v, 0.1 * v)
    transfer = leaky(lin_w @ fc1_w.T + fc1_b) @ fc2_w.T + fc2_b
    r = leaky(x @ fc3_w.T + fc3_b) @ fc4_w.T + fc4_b
    h = r + x @ transfer.T
    if classifier is not None:
        zs = classifier.T
        if norm_weight:
            zs = zs / jnp.maximum(jnp.linalg.norm(zs, axis=0, keepdims=True), 1e-12)
    else:
        zs = zs_w
    if norm_weight:
        h = norm_temperature * h / jnp.maximum(
            jnp.linalg.norm(h, axis=1, keepdims=True), 1e-12)
    s = h @ zs
    if use_bias < 0:
        s = s + use_bias
    return s


if __name__ == "__main__":
    B = 40              # RoI batch; not a multiple of 16 -> exercises padding
    INPUT_SIZE = 128    # D' (box-head feature dim)
    ZS_DIM = 128        # zs_weight_dim
    NUM_CLASSES = 200   # zs_weight: 201 cols -> class-tiled by 128 (2 tiles)
    USE_BIAS = -0.5     # exercises the cls_bias path
    NORM_TEMP = 50.0

    key = jax.random.PRNGKey(0)
    kx, kp, kc = jax.random.split(key, 3)
    x = jax.random.normal(kx, (B, INPUT_SIZE), jnp.float32)
    params = init_params(kp, INPUT_SIZE, ZS_DIM, NUM_CLASSES)

    # one-time: transfer^T + fused weight concat + class padding + casts
    prepared = prepare_params(params, use_bias=USE_BIAS, class_tile=128)

    # --- default (stored zs_weight) path; tb=16 -> 3 batch x 2 class tiles ---
    out = weight_transfer_zero_shot_classifier(
        x, prepared, norm_temperature=NORM_TEMP, tb=16)
    out = jax.block_until_ready(out)
    assert out.shape == (B, NUM_CLASSES + 1), out.shape
    ref = _reference(x, params, NORM_TEMP, USE_BIAS)
    scale = max(float(jnp.max(jnp.abs(ref))), 1.0)
    rel = float(jnp.max(jnp.abs(out - ref))) / scale
    assert rel <= 0.04, ("default-path mismatch vs reference", rel)

    # --- runtime classifier path: (C', D) permuted + renormalized ---
    classifier = jax.random.normal(kc, (77, ZS_DIM), jnp.float32)
    out_c = weight_transfer_zero_shot_classifier(
        x, prepared, classifier=classifier, norm_temperature=NORM_TEMP, tb=16)
    out_c = jax.block_until_ready(out_c)
    assert out_c.shape == (B, 77), out_c.shape
    ref_c = _reference(x, params, NORM_TEMP, USE_BIAS, classifier=classifier)
    scale_c = max(float(jnp.max(jnp.abs(ref_c))), 1.0)
    rel_c = float(jnp.max(jnp.abs(out_c - ref_c))) / scale_c
    assert rel_c <= 0.04, ("classifier-path mismatch vs reference", rel_c)

    print("KERNEL_OK")
</pallas_src>

<mosaic_0001>
module attributes {stable_mosaic.version = 11 : i64} {
  func.func @transfer_t_kernel(%arg0: memref<128x128xf32, #tpu.memory_space<vmem>>, %arg1: memref<128x128xf32, #tpu.memory_space<vmem>>, %arg2: memref<128x1xf32, #tpu.memory_space<vmem>>, %arg3: memref<128x128xf32, #tpu.memory_space<vmem>>, %arg4: memref<128x1xf32, #tpu.memory_space<vmem>>, %arg5: memref<128x128xbf16, #tpu.memory_space<vmem>>) attributes {dimension_semantics = [], scalar_prefetch = 0 : i64, scratch_operands = 0 : i64, tpu.core_type = #tpu.core_type<tc>} {
    %c0 = arith.constant 0 : index
    %c0_0 = arith.constant 0 : index
    %0 = vector.load %arg1[%c0, %c0_0] : memref<128x128xf32, #tpu.memory_space<vmem>>, vector<128x128xf32>
    %1 = arith.truncf %0 : vector<128x128xf32> to vector<128x128xbf16>
    %c0_1 = arith.constant 0 : index
    %c0_2 = arith.constant 0 : index
    %2 = vector.load %arg0[%c0_1, %c0_2] : memref<128x128xf32, #tpu.memory_space<vmem>>, vector<128x128xf32>
    %3 = arith.truncf %2 : vector<128x128xf32> to vector<128x128xbf16>
    %cst = arith.constant dense<0.000000e+00> : vector<128x128xf32>
    %4 = tpu.matmul %1, %3, %cst {dimension_numbers = #tpu.dot_dimension_numbers<[1], [0], [0], [1], [0, 0, 1, 1], [], []>} : vector<128x128xbf16>, vector<128x128xbf16>, vector<128x128xf32> -> vector<128x128xf32>
    %c0_3 = arith.constant 0 : index
    %c0_4 = arith.constant 0 : index
    %5 = vector.load %arg2[%c0_3, %c0_4] : memref<128x1xf32, #tpu.memory_space<vmem>>, vector<128x1xf32>
    %6 = vector.broadcast %5 : vector<128x1xf32> to vector<128x128xf32>
    %7 = arith.addf %4, %6 : vector<128x128xf32>
    %cst_5 = arith.constant 0.000000e+00 : f32
    %8 = vector.broadcast %cst_5 : f32 to vector<128x128xf32>
    %9 = arith.cmpf oge, %7, %8 : vector<128x128xf32>
    %cst_6 = arith.constant 1.000000e-01 : f32
    %10 = vector.broadcast %cst_6 : f32 to vector<128x128xf32>
    %11 = arith.mulf %10, %7 : vector<128x128xf32>
    %12 = arith.select %9, %7, %11 : vector<128x128xi1>, vector<128x128xf32>
    %c0_7 = arith.constant 0 : index
    %c0_8 = arith.constant 0 : index
    %13 = vector.load %arg3[%c0_7, %c0_8] : memref<128x128xf32, #tpu.memory_space<vmem>>, vector<128x128xf32>
    %14 = arith.truncf %13 : vector<128x128xf32> to vector<128x128xbf16>
    %15 = arith.truncf %12 : vector<128x128xf32> to vector<128x128xbf16>
    %cst_9 = arith.constant dense<0.000000e+00> : vector<128x128xf32>
    %16 = tpu.matmul %14, %15, %cst_9 {dimension_numbers = #tpu.dot_dimension_numbers<[1], [0], [0], [1], [0, 0, 1, 1], [], []>} : vector<128x128xbf16>, vector<128x128xbf16>, vector<128x128xf32> -> vector<128x128xf32>
    %c0_10 = arith.constant 0 : index
    %c0_11 = arith.constant 0 : index
    %17 = vector.load %arg4[%c0_10, %c0_11] : memref<128x1xf32, #tpu.memory_space<vmem>>, vector<128x1xf32>
    %18 = vector.broadcast %17 : vector<128x1xf32> to vector<128x128xf32>
    %19 = arith.addf %16, %18 : vector<128x128xf32>
    %20 = arith.truncf %19 : vector<128x128xf32> to vector<128x128xbf16>
    %c0_12 = arith.constant 0 : index
    %c0_13 = arith.constant 0 : index
    %21 = vector.load %arg5[%c0_12, %c0_13] : memref<128x128xbf16, #tpu.memory_space<vmem>>, vector<128x128xbf16>
    tpu.vector_store %arg5[%c0_12, %c0_13], %20 {strides = array<i32>} : memref<128x128xbf16, #tpu.memory_space<vmem>>, vector<128x128xbf16>,
    return
  }
}

</mosaic_0001>

<bundles_post_ra>
// kernel: tpu_custom_call.1
= control target key start
LH: loop header
LB: loop body
LE: loop exit
PB: predicated region body
PF: predicated region fallthrough
CT: control target
= control target key end

     0   :  { %10 = vsyncpa [#allocation3], 0  ;;  %s878_s0 = inlined_call_operand.vmem [shape: f32[128,128], index: 0, kind: input, shape index: {}]   ;;  %s879_s1 = inlined_call_operand.vmem [shape: f32[128,128], index: 1, kind: input, shape index: {}]   ;;  %s880_s2 = inlined_call_operand.vmem [shape: f32[128,1], index: 2, kind: input, shape index: {}]   ;;  %s881_s3 = inlined_call_operand.hbm [shape: f32[128,128], index: 3, kind: input, shape index: {}]   ;;  %s882_s4 = inlined_call_operand.vmem [shape: f32[128,1], index: 4, kind: input, shape index: {}]   ;;  %s883_s5 = inlined_call_operand.hbm [shape: bf16[128,128], index: 5, kind: output, shape index: {}]  }
   0x1   :  { %11 = vsyncpa [#allocation4], 0  ;;  %s22_s20 = sshll.u32 %s881_s3, 4  ;;  %s631_s21 = smov [#allocation2]   ;;  %s23_s20 = int_to_ptr.hbm [resolvable:$true] %s22_s20 }
   0x2   :  { %s24_s22 = sshll.u32 %s631_s21, 4  ;;  %s632_s23 = smov 128   ;;  %s25_s22 = int_to_ptr.vmem [resolvable:$true] %s24_s22 }
   0x3   :  { %s633_s24 = smov 8  }
   0x4   :  { %30 = dma.hbm_to_vmem [thread:$0]  %s23_s20, 2048, %s25_s22, [#allocation3], %s632_s23, %s632_s23, %s633_s24  }
   0x5   :  { %627 = dma.done.wait [#allocation3], 2048  }
   0x6   :  { %628 = vsyncadd [#allocation3], 4294965248  ;;  %v634_v0 = vmov 0   ;;  %v75_v1 = vld [vmem:[%s878_s0 + $0x70] sm:$0xff]  ;;  %v76_v2 = vld [vmem:[%s878_s0 + $0x78] sm:$0xff]  ;;  %s493_s20 = sshll.u32 %s883_s5, 4  ;;  %s494_s20 = int_to_ptr.hbm [resolvable:$true] %s493_s20 }
   0x7   :  { %576 = vset.pattern.permute.xlu0 %v634_v0  ;;  %577 = vset.pattern.permute.xlu1 %v634_v0  ;;  %v73_v3 = vld [vmem:[%s878_s0 + $0x60] sm:$0xff]  ;;  %v84_v4 = vpack.c.bf16 %v76_v2, %v75_v1  ;;  %v74_v5 = vld [vmem:[%s878_s0 + $0x68] sm:$0xff]  ;;  %v99_v6 = vld [vmem:[%s880_s2 + $0x70] sm:$0xff]  ;;  %s636_s21 = smov 64   ;;  %s637_s22 = smov 4  }
   0x8   :  { %578 = vset.pattern.permute.xlu2 %v634_v0  ;;  %v83_v7 = vpack.c.bf16 %v74_v5, %v73_v3  ;;  %v97_v8 = vld [vmem:[%s880_s2 + $0x60] sm:$0xff]  ;;  %v71_v9 = vld [vmem:[%s878_s0 + $0x50] sm:$0xff]  ;;  %v72_v10 = vld [vmem:[%s878_s0 + $0x58] sm:$0xff]  ;;  %173 = vperm.xlu0 %576, %v99_v6  }
   0x9   :  { %181 = vmatpush.bf16.msra.mxu0 %v84_v4  ;;  %553 = vmatpush.bf16.msra.mxu2 %v84_v4  ;;  %v82_v11 = vpack.c.bf16 %v72_v10, %v71_v9  ;;  %v69_v12 = vld [vmem:[%s878_s0 + $0x40] sm:$0xff]  ;;  %v70_v13 = vld [vmem:[%s878_s0 + $0x48] sm:$0xff]  ;;  %v100_v14 = vld [vmem:[%s880_s2 + $0x78] sm:$0xff] }
   0xa   :  { %163 = vperm.xlu1 %577, %v97_v8   ;;  %v98_v15 = vld [vmem:[%s880_s2 + $0x68] sm:$0xff]  ;;  %v81_v16 = vpack.c.bf16 %v70_v13, %v69_v12  ;;  %v67_v17 = vld [vmem:[%s878_s0 + $0x30] sm:$0xff]  ;;  %v68_v18 = vld [vmem:[%s878_s0 + $0x38] sm:$0xff] }
   0xb   :  { %v80_v19 = vpack.c.bf16 %v68_v18, %v67_v17  ;;  %v65_v20 = vld [vmem:[%s878_s0 + $0x20] sm:$0xff]  ;;  %v66_v21 = vld [vmem:[%s878_s0 + $0x28] sm:$0xff]  ;;  %v95_v24 = vld [vmem:[%s880_s2 + $0x50] sm:$0xff] }
   0xc   :  { %v93_v22 = vld [vmem:[%s880_s2 + $0x40] sm:$0xff]  ;;  %v94_v23 = vld [vmem:[%s880_s2 + $0x48] sm:$0xff]  ;;  %v79_v25 = vpack.c.bf16 %v66_v21, %v65_v20  ;;  %v63_v26 = vld [vmem:[%s878_s0 + $0x10] sm:$0xff]  ;;  %153 = vperm.xlu2 %578, %v95_v24  }
   0xd   :  { %182 = vmatpush.bf16.msra.mxu0 %v83_v7  ;;  %554 = vmatpush.bf16.msra.mxu2 %v83_v7  ;;  %v64_v27 = vld [vmem:[%s878_s0 + $0x18] sm:$0xff]  ;;  %v61_v29 = vld [vmem:[%s878_s0] sm:$0xff]  ;;  %v62_v30 = vld [vmem:[%s878_s0 + $0x8] sm:$0xff] }
   0xe   :  { %v78_v28 = vpack.c.bf16 %v64_v27, %v63_v26  ;;  %v92_v31 = vld [vmem:[%s880_s2 + $0x38] sm:$0xff]  ;;  %v89_v32 = vld [vmem:[%s880_s2 + $0x20] sm:$0xff]  ;;  %v77_v35 = vpack.c.bf16 %v62_v30, %v61_v29  ;;  %v38_v36 = vld [vmem:[%s879_s1 + $0x8] sm:$0xff] }
   0xf   :  { %v37_v33 = vld [vmem:[%s879_s1] sm:$0xff]  ;;  %v96_v34 = vld [vmem:[%s880_s2 + $0x58] sm:$0xff]  ;;  %v46_v38 = vld [vmem:[%s879_s1 + $0x48] sm:$0xff] }
  0x10   :  { %178 = vperm.xlu0 %576, %v100_v14   ;;  %v45_v37 = vld [vmem:[%s879_s1 + $0x40] sm:$0xff]  ;;  %v53_v39 = vpack.c.bf16 %v38_v36, %v37_v33  ;;  %v87_v41 = vld [vmem:[%s880_s2 + $0x10] sm:$0xff]  ;;  %v88_v42 = vld [vmem:[%s880_s2 + $0x18] sm:$0xff] }
  0x11   :  { %183 = vmatpush.bf16.msra.mxu0 %v82_v11  ;;  %555 = vmatpush.bf16.msra.mxu2 %v82_v11  ;;  %v57_v40 = vpack.c.bf16 %v46_v38, %v45_v37  ;;  %v91_v43 = vld [vmem:[%s880_s2 + $0x30] sm:$0xff]  ;;  %v86_v44 = vld [vmem:[%s880_s2 + $0x8] sm:$0xff]  ;;  %v310_v45 = vld [vmem:[%s882_s4] sm:$0xff] }
  0x12   :  { %168 = vperm.xlu1 %577, %v98_v15   ;;  %v39_v46 = vld [vmem:[%s879_s1 + $0x10] sm:$0xff]  ;;  %v90_v47 = vld [vmem:[%s880_s2 + $0x28] sm:$0xff]  ;;  %v40_v48 = vld [vmem:[%s879_s1 + $0x18] sm:$0xff] }
  0x13   :  { %v47_v49 = vld [vmem:[%s879_s1 + $0x50] sm:$0xff]  ;;  %v48_v50 = vld [vmem:[%s879_s1 + $0x58] sm:$0xff]  ;;  %v54_v51 = vpack.c.bf16 %v40_v48, %v39_v46  ;;  %v85_v55 = vld [vmem:[%s880_s2] sm:$0xff] }
  0x14   :  { %158 = vperm.xlu2 %578, %v96_v34   ;;  %v58_v52 = vpack.c.bf16 %v48_v50, %v47_v49  ;;  %v312_v53 = vld [vmem:[%s882_s4 + $0x10] sm:$0xff]  ;;  %v313_v54 = vld [vmem:[%s882_s4 + $0x18] sm:$0xff]  ;;  %v315_v56 = vld [vmem:[%s882_s4 + $0x28] sm:$0xff] }
  0x15   :  { %184 = vmatpush.bf16.msra.mxu0 %v81_v16  ;;  %556 = vmatpush.bf16.msra.mxu2 %v81_v16  ;;  %v316_v57 = vld [vmem:[%s882_s4 + $0x30] sm:$0xff]  ;;  %v41_v58 = vld [vmem:[%s879_s1 + $0x20] sm:$0xff]  ;;  %v311_v59 = vld [vmem:[%s882_s4 + $0x8] sm:$0xff] }
  0x16   :  { %v42_v60 = vld [vmem:[%s879_s1 + $0x28] sm:$0xff]  ;;  %v49_v61 = vld [vmem:[%s879_s1 + $0x60] sm:$0xff]  ;;  %v321_v4 = vld [vmem:[%s882_s4 + $0x58] sm:$0xff] }
  0x17   :  { %v50_v62 = vld [vmem:[%s879_s1 + $0x68] sm:$0xff]  ;;  %v55_v63 = vpack.c.bf16 %v42_v60, %v41_v58  ;;  %v318_v1 = vld [vmem:[%s882_s4 + $0x40] sm:$0xff]  ;;  %v43_v6 = vld [vmem:[%s879_s1 + $0x30] sm:$0xff] }
  0x18   :  { %143 = vperm.xlu0 %576, %v93_v22   ;;  %v59_v0 = vpack.c.bf16 %v50_v62, %v49_v61  ;;  %v319_v2 = vld [vmem:[%s882_s4 + $0x48] sm:$0xff]  ;;  %v314_v3 = vld [vmem:[%s882_s4 + $0x20] sm:$0xff]  ;;  %v317_v7 = vld [vmem:[%s882_s4 + $0x38] sm:$0xff] }
  0x19   :  { %185 = vmatpush.bf16.msra.mxu0 %v80_v19  ;;  %557 = vmatpush.bf16.msra.mxu2 %v80_v19  ;;  %v322_v5 = vld [vmem:[%s882_s4 + $0x60] sm:$0xff]  ;;  %v44_v8 = vld [vmem:[%s879_s1 + $0x38] sm:$0xff]  ;;  %v51_v9 = vld [vmem:[%s879_s1 + $0x70] sm:$0xff] }
  0x1a   :  { %148 = vperm.xlu1 %577, %v94_v23   ;;  %v52_v10 = vld [vmem:[%s879_s1 + $0x78] sm:$0xff]  ;;  %v56_v11 = vpack.c.bf16 %v44_v8, %v43_v6  ;;  %v324_v13 = vld [vmem:[%s882_s4 + $0x70] sm:$0xff]  ;;  %v323_v16 = vld [vmem:[%s882_s4 + $0x68] sm:$0xff] }
  0x1b   :  { %v60_v12 = vpack.c.bf16 %v52_v10, %v51_v9  ;;  %v325_v14 = vld [vmem:[%s882_s4 + $0x78] sm:$0xff]  ;;  %v320_v15 = vld [vmem:[%s882_s4 + $0x50] sm:$0xff]  ;;  %s635_s4 = smov [#allocation5]  }
  0x1c   :  { %133 = vperm.xlu2 %578, %v91_v43   ;;  %s491_s17 = sshll.u32 %s635_s4, 4  ;;  %s492_s17 = int_to_ptr.vmem [resolvable:$true] %s491_s17 }
  0x1d   :  { %186 = vmatpush.bf16.msra.mxu0 %v79_v25  ;;  %558 = vmatpush.bf16.msra.mxu2 %v79_v25 }
  0x20   :  { %138 = vperm.xlu0 %576, %v92_v31  }
  0x21   :  { %187 = vmatpush.bf16.msra.mxu0 %v78_v28  ;;  %559 = vmatpush.bf16.msra.mxu2 %v78_v28 }
  0x22   :  { %123 = vperm.xlu1 %577, %v89_v32  }
  0x24   :  { %128 = vperm.xlu2 %578, %v90_v47  }
  0x25   :  { %188 = vmatpush.bf16.msra.mxu0 %v77_v35  ;;  %560 = vmatpush.bf16.msra.mxu2 %v77_v35 }
  0x28   :  { %189 = vmatmul.bf16.vlgmr.msra.gmra.mxu0 %v53_v39  ;;  %209 = vmatmul.bf16.vlgmr.msra.gmra.mxu2 %v57_v40 }
  0x29   :  { %113 = vperm.xlu0 %576, %v87_v41  }
  0x2a   :  { %118 = vperm.xlu1 %577, %v88_v42  }
  0x2c   :  { %103 = vperm.xlu2 %578, %v85_v55  }
  0x31   :  { %108 = vperm.xlu0 %576, %v86_v44  }
  0x32   :  { %328 = vperm.xlu1 %577, %v310_v45  }
  0x34   :  { %333 = vperm.xlu2 %578, %v311_v59  }
  0x38   :  { %194 = vmatmul.bf16.gmra.mxu0 %v54_v51  ;;  %214 = vmatmul.bf16.gmra.mxu2 %v58_v52 }
  0x39   :  { %338 = vperm.xlu0 %576, %v312_v53  }
  0x3a   :  { %343 = vperm.xlu1 %577, %v313_v54  }
  0x3c   :  { %348 = vperm.xlu2 %578, %v314_v3  }
  0x41   :  { %353 = vperm.xlu0 %576, %v315_v56  }
  0x42   :  { %358 = vperm.xlu1 %577, %v316_v57  }
  0x44   :  { %363 = vperm.xlu2 %578, %v317_v7  }
  0x48   :  { %199 = vmatmul.bf16.gmra.mxu0 %v55_v63  ;;  %219 = vmatmul.bf16.gmra.mxu2 %v59_v0 }
  0x49   :  { %368 = vperm.xlu0 %576, %v318_v1  }
  0x4a   :  { %373 = vperm.xlu1 %577, %v319_v2  }
  0x4c   :  { %378 = vperm.xlu2 %578, %v320_v15  }
  0x51   :  { %383 = vperm.xlu0 %576, %v321_v4  }
  0x52   :  { %388 = vperm.xlu1 %577, %v322_v5  }
  0x54   :  { %393 = vperm.xlu2 %578, %v323_v16  }
  0x58   :  { %204 = vmatmul.bf16.gmra.mxu0 %v56_v11  ;;  %224 = vmatmul.bf16.gmra.mxu2 %v60_v12 }
  0x59   :  { %398 = vperm.xlu0 %576, %v324_v13  }
  0x5a   :  { %403 = vperm.xlu1 %577, %v325_v14  }
  0x66   :  { %v154_v30 = vpop.permute.xlu2 %153 }
  0x6e   :  { %v159_v35 = vpop.permute.xlu2 %158 }
  0x76   :  { %v134_v43 = vpop.permute.xlu2 %133 }
  0x7a   :  { %v174_v25 = vpop.permute.xlu0 %173 }
  0x7c   :  { %v164_v27 = vpop.permute.xlu1 %163 }
  0x7e   :  { %v129_v2 = vpop.permute.xlu2 %128 }
  0x82   :  { %v179_v29 = vpop.permute.xlu0 %178 }
  0x84   :  { %v169_v32 = vpop.permute.xlu1 %168 }
  0x8a   :  { %v144_v34 = vpop.permute.xlu0 %143 }
  0x8c   :  { %v149_v37 = vpop.permute.xlu1 %148 }
  0x92   :  { %v139_v42 = vpop.permute.xlu0 %138 }
  0x94   :  { %v124_v56 = vpop.permute.xlu1 %123 }
  0x9b   :  { %v114_v1 = vpop.permute.xlu0 %113 }
  0x9c   :  { %v119_v14 = vpop.permute.xlu1 %118 }
  0xa5   :  { %v863_v17 = vpop.f32.mrf.mxu0 }
  0xab   :  { %v210_v18 = vpop.f32.mrf.mxu2 }
  0xac   :  { %v211_v60 = vadd.f32 %v210_v18, %v144_v34 }
  0xad   :  { %v865_v19 = vpop.f32.mrf.mxu0 }
  0xae   :  { %v254_v6 = vmul.f32 0.1, %v211_v60  ;;  %vm238_vm7 = vcmp.ge.f32.partialorder %v211_v60, 0.0 }
  0xb0   :  { %v270_v15 = vsel %vm238_vm7, %v211_v60, %v254_v6  ;;  %v285_v60 = vld [vmem:[#allocation2 + $0x38] sm:$0xff] }
  0xb3   :  { %v212_v20 = vpop.f32.mrf.mxu2 }
  0xb4   :  { %v213_v54 = vadd.f32 %v212_v20, %v149_v37 }
  0xb5   :  { %v867_v21 = vpop.f32.mrf.mxu0 }
  0xb6   :  { %v255_v63 = vmul.f32 0.1, %v213_v54  ;;  %vm239_vm6 = vcmp.ge.f32.partialorder %v213_v54, 0.0  ;;  %v196_v16 = vadd.f32 %v867_v21, %v114_v1  ;;  %v329_v1 = vpop.permute.xlu1 %328 }
  0xb8   :  { %v271_v9 = vsel %vm239_vm6, %v213_v54, %v255_v63  ;;  %vm232_vm12 = vcmp.ge.f32.partialorder %v196_v16, 0.0  ;;  %v283_v54 = vld [vmem:[#allocation2 + $0x28] sm:$0xff] }
  0xb9   :  { %v306_v20 = vpack.c.bf16 %v271_v9, %v270_v15 }
  0xbb   :  { %v215_v22 = vpop.f32.mrf.mxu2 }
  0xbc   :  { %v216_v50 = vadd.f32 %v215_v22, %v154_v30 }
  0xbd   :  { %v869_v23 = vpop.f32.mrf.mxu0 }
  0xbe   :  { %v256_v61 = vmul.f32 0.1, %v216_v50  ;;  %vm240_vm5 = vcmp.ge.f32.partialorder %v216_v50, 0.0  ;;  %v198_v18 = vadd.f32 %v869_v23, %v119_v14 }
  0xc0   :  { %v272_v7 = vsel %vm240_vm5, %v216_v50, %v256_v61  ;;  %v249_v21 = vmul.f32 0.1, %v198_v18  ;;  %vm233_vm13 = vcmp.ge.f32.partialorder %v198_v18, 0.0  ;;  %v289_v50 = vld [vmem:[#allocation2 + $0x58] sm:$0xff]  ;;  %v292_v61 = vld [vmem:[#allocation2 + $0x70] sm:$0xff] }
  0xc3   :  { %v217_v24 = vpop.f32.mrf.mxu2 }
  0xc4   :  { %v218_v47 = vadd.f32 %v217_v24, %v159_v35 }
  0xc5   :  { %v200_v28 = vpop.f32.mrf.mxu0 }
  0xc6   :  { %v257_v57 = vmul.f32 0.1, %v218_v47  ;;  %vm241_vm4 = vcmp.ge.f32.partialorder %v218_v47, 0.0  ;;  %v201_v10 = vadd.f32 %v200_v28, %v124_v56  ;;  %v104_v28 = vpop.permute.xlu2 %103  ;;  %v291_v56 = vld [vmem:[#allocation2 + $0x68] sm:$0xff] }
  0xc7   :  { %v191_v30 = vadd.f32 %v863_v17, %v104_v28 }
  0xc8   :  { %v273_v5 = vsel %vm241_vm4, %v218_v47, %v257_v57  ;;  %v250_v22 = vmul.f32 0.1, %v201_v10  ;;  %vm234_vm10 = vcmp.ge.f32.partialorder %v201_v10, 0.0  ;;  %v280_v47 = vld [vmem:[#allocation2 + $0x10] sm:$0xff] }
  0xc9   :  { %v307_v8 = vpack.c.bf16 %v273_v5, %v272_v7  ;;  %vm230_vm14 = vcmp.ge.f32.partialorder %v191_v30, 0.0 }
  0xcb   :  { %v220_v26 = vpop.f32.mrf.mxu2 }
  0xcc   :  { %v221_v44 = vadd.f32 %v220_v26, %v164_v27  ;;  %v109_v27 = vpop.permute.xlu0 %108 }
  0xcd   :  { %v202_v33 = vpop.f32.mrf.mxu0 }
  0xce   :  { %v258_v51 = vmul.f32 0.1, %v221_v44  ;;  %vm242_vm3 = vcmp.ge.f32.partialorder %v221_v44, 0.0  ;;  %v203_v11 = vadd.f32 %v202_v33, %v129_v2  ;;  %v266_v33 = vsel %vm234_vm10, %v201_v10, %v250_v22 }
  0xd0   :  { %v274_v62 = vsel %vm242_vm3, %v221_v44, %v258_v51  ;;  %v251_v24 = vmul.f32 0.1, %v203_v11  ;;  %vm235_vm11 = vcmp.ge.f32.partialorder %v203_v11, 0.0 }
  0xd2   :  { %v267_v23 = vsel %vm235_vm11, %v203_v11, %v251_v24 }
  0xd3   :  { %v222_v31 = vpop.f32.mrf.mxu2  ;;  %v304_v34 = vpack.c.bf16 %v267_v23, %v266_v33 }
  0xd4   :  { %v223_v40 = vadd.f32 %v222_v31, %v169_v32  ;;  %v248_v32 = vmul.f32 0.1, %v196_v16  ;;  %v339_v2 = vpop.permute.xlu0 %338 }
  0xd5   :  { %v205_v39 = vpop.f32.mrf.mxu0 }
  0xd6   :  { %v259_v48 = vmul.f32 0.1, %v223_v40  ;;  %vm243_vm2 = vcmp.ge.f32.partialorder %v223_v40, 0.0  ;;  %v206_v3 = vadd.f32 %v205_v39, %v134_v43  ;;  %v264_v37 = vsel %vm232_vm12, %v196_v16, %v248_v32  ;;  %v287_v43 = vld [vmem:[#allocation2 + $0x48] sm:$0xff] }
  0xd8   :  { %v275_v58 = vsel %vm243_vm2, %v223_v40, %v259_v48  ;;  %v252_v12 = vmul.f32 0.1, %v206_v3  ;;  %vm236_vm8 = vcmp.ge.f32.partialorder %v206_v3, 0.0  ;;  %v278_v40 = vld [vmem:[#allocation2] sm:$0xff]  ;;  %v281_v48 = vld [vmem:[#allocation2 + $0x18] sm:$0xff] }
  0xd9   :  { %v308_v0 = vpack.c.bf16 %v275_v58, %v274_v62  ;;  %v295_v51 = vpack.c.bf16 %v281_v48, %v280_v47  ;;  %v293_v62 = vld [vmem:[#allocation2 + $0x78] sm:$0xff] }
  0xdb   :  { %v225_v36 = vpop.f32.mrf.mxu2 }
  0xdc   :  { %v226_v38 = vadd.f32 %v225_v36, %v174_v25  ;;  %v268_v25 = vsel %vm236_vm8, %v206_v3, %v252_v12  ;;  %v246_v36 = vmul.f32 0.1, %v191_v30  ;;  %v344_v3 = vpop.permute.xlu1 %343  ;;  %v354_v6 = vpop.permute.xlu0 %353 }
  0xdd   :  { %v207_v59 = vpop.f32.mrf.mxu0 }
  0xde   :  { %v260_v45 = vmul.f32 0.1, %v226_v38  ;;  %vm244_vm0 = vcmp.ge.f32.partialorder %v226_v38, 0.0  ;;  %v208_v4 = vadd.f32 %v207_v59, %v139_v42  ;;  %v262_v17 = vsel %vm230_vm14, %v191_v30, %v246_v36  ;;  %v286_v42 = vld [vmem:[#allocation2 + $0x40] sm:$0xff]  ;;  %v284_v59 = vld [vmem:[#allocation2 + $0x30] sm:$0xff] }
  0xdf   :  { %v297_v63 = vpack.c.bf16 %v285_v60, %v284_v59 }
  0xe0   :  { %v276_v52 = vsel %vm244_vm0, %v226_v38, %v260_v45  ;;  %v253_v13 = vmul.f32 0.1, %v208_v4  ;;  %vm237_vm9 = vcmp.ge.f32.partialorder %v208_v4, 0.0  ;;  %v265_v38 = vsel %vm233_vm13, %v198_v18, %v249_v21 }
  0xe2   :  { %v269_v26 = vsel %vm237_vm9, %v208_v4, %v253_v13  ;;  %v334_v4 = vpop.permute.xlu2 %333 }
  0xe3   :  { %v227_v41 = vpop.f32.mrf.mxu2  ;;  %v305_v31 = vpack.c.bf16 %v269_v26, %v268_v25 }
  0xe4   :  { %v228_v46 = vadd.f32 %v227_v41, %v179_v29  ;;  %v193_v29 = vadd.f32 %v865_v19, %v109_v27  ;;  %v303_v19 = vpack.c.bf16 %v265_v38, %v264_v37  ;;  %v279_v41 = vld [vmem:[#allocation2 + $0x8] sm:$0xff]  ;;  %v359_v7 = vpop.permute.xlu1 %358  ;;  %v369_v14 = vpop.permute.xlu0 %368 }
  0xe5   :  { %v294_v45 = vpack.c.bf16 %v279_v41, %v278_v40 }
  0xe6   :  { %v261_v49 = vmul.f32 0.1, %v228_v46  ;;  %vm245_vm1 = vcmp.ge.f32.partialorder %v228_v46, 0.0  ;;  %v247_v35 = vmul.f32 0.1, %v193_v29  ;;  %vm231_vm15 = vcmp.ge.f32.partialorder %v193_v29, 0.0 }
  0xe8   :  { %v277_v53 = vsel %vm245_vm1, %v228_v46, %v261_v49  ;;  %v263_v39 = vsel %vm231_vm15, %v193_v29, %v247_v35  ;;  %v298_v46 = vpack.c.bf16 %v287_v43, %v286_v42  ;;  %v288_v49 = vld [vmem:[#allocation2 + $0x50] sm:$0xff] }
  0xe9   :  { %v309_v55 = vpack.c.bf16 %v277_v53, %v276_v52  ;;  %v302_v44 = vpack.c.bf16 %v263_v39, %v262_v17  ;;  %v299_v52 = vpack.c.bf16 %v289_v50, %v288_v49  ;;  %v282_v53 = vld [vmem:[#allocation2 + $0x20] sm:$0xff] }
  0xea   :  { %v296_v57 = vpack.c.bf16 %v283_v54, %v282_v53  ;;  %v349_v10 = vpop.permute.xlu2 %348 }
  0xeb   :  { %406 = vmatpush.bf16.msra.mxu1 %v309_v55  ;;  %561 = vmatpush.bf16.msra.mxu3 %v309_v55  ;;  %v290_v55 = vld [vmem:[#allocation2 + $0x60] sm:$0xff] }
  0xec   :  { %v300_v58 = vpack.c.bf16 %v291_v56, %v290_v55  ;;  %v374_v15 = vpop.permute.xlu1 %373  ;;  %v384_v32 = vpop.permute.xlu0 %383 }
  0xef   :  { %407 = vmatpush.bf16.msra.mxu1 %v308_v0  ;;  %562 = vmatpush.bf16.msra.mxu3 %v308_v0  ;;  %v301_v0 = vpack.c.bf16 %v293_v62, %v292_v61 }
  0xf2   :  { %v364_v25 = vpop.permute.xlu2 %363 }
  0xf3   :  { %408 = vmatpush.bf16.msra.mxu1 %v307_v8  ;;  %563 = vmatpush.bf16.msra.mxu3 %v307_v8 }
  0xf4   :  { %v389_v40 = vpop.permute.xlu1 %388 }
  0xf7   :  { %409 = vmatpush.bf16.msra.mxu1 %v306_v20  ;;  %564 = vmatpush.bf16.msra.mxu3 %v306_v20 }
  0xfb   :  { %410 = vmatpush.bf16.msra.mxu1 %v305_v31  ;;  %565 = vmatpush.bf16.msra.mxu3 %v305_v31  ;;  %v379_v31 = vpop.permute.xlu2 %378 }
  0xff   :  { %411 = vmatpush.bf16.msra.mxu1 %v304_v34  ;;  %566 = vmatpush.bf16.msra.mxu3 %v304_v34 }
 0x103   :  { %412 = vmatpush.bf16.msra.mxu1 %v303_v19  ;;  %567 = vmatpush.bf16.msra.mxu3 %v303_v19  ;;  %v394_v39 = vpop.permute.xlu2 %393 }
 0x107   :  { %413 = vmatpush.bf16.msra.mxu1 %v302_v44  ;;  %568 = vmatpush.bf16.msra.mxu3 %v302_v44 }
 0x10a   :  { %414 = vmatmul.bf16.vlgmr.msra.gmra.mxu1 %v294_v45  ;;  %434 = vmatmul.bf16.vlgmr.msra.gmra.mxu3 %v298_v46 }
 0x11a   :  { %419 = vmatmul.bf16.gmra.mxu1 %v295_v51  ;;  %439 = vmatmul.bf16.gmra.mxu3 %v299_v52  ;;  %v399_v51 = vpop.permute.xlu0 %398  ;;  %v404_v52 = vpop.permute.xlu1 %403 }
 0x12a   :  { %424 = vmatmul.bf16.gmra.mxu1 %v296_v57  ;;  %444 = vmatmul.bf16.gmra.mxu3 %v300_v58 }
 0x13a   :  { %429 = vmatmul.bf16.gmra.mxu1 %v297_v63  ;;  %449 = vmatmul.bf16.gmra.mxu3 %v301_v0 }
 0x187   :  { %v415_v5 = vpop.f32.mrf.mxu1 }
 0x188   :  { %v416_v11 = vadd.f32 %v415_v5, %v329_v1 }
 0x18d   :  { %v435_v8 = vpop.f32.mrf.mxu3 }
 0x18e   :  { %v436_v18 = vadd.f32 %v435_v8, %v369_v14 }
 0x18f   :  { %v417_v9 = vpop.f32.mrf.mxu1 }
 0x190   :  { %v418_v12 = vadd.f32 %v417_v9, %v334_v4 }
 0x192   :  { %v509_v13 = vpack.c.bf16 %v418_v12, %v416_v11 }
 0x194   :  { %510 = vst [vmem:[#allocation5] sm:$0xff] %v509_v13  }
 0x195   :  { %v437_v16 = vpop.f32.mrf.mxu3 }
 0x196   :  { %v438_v20 = vadd.f32 %v437_v16, %v374_v15 }
 0x197   :  { %v420_v22 = vpop.f32.mrf.mxu1 }
 0x198   :  { %v529_v24 = vpack.c.bf16 %v438_v20, %v436_v18  ;;  %v421_v28 = vadd.f32 %v420_v22, %v339_v2 }
 0x19a   :  { %549 = vst [vmem:[#allocation5 + $0x20] sm:$0xff] %v529_v24  }
 0x19d   :  { %v440_v26 = vpop.f32.mrf.mxu3 }
 0x19e   :  { %v441_v33 = vadd.f32 %v440_v26, %v379_v31 }
 0x19f   :  { %v422_v27 = vpop.f32.mrf.mxu1 }
 0x1a0   :  { %v423_v29 = vadd.f32 %v422_v27, %v344_v3 }
 0x1a2   :  { %v514_v30 = vpack.c.bf16 %v423_v29, %v421_v28 }
 0x1a4   :  { %546 = vst [vmem:[#allocation5 + $0x8] sm:$0xff] %v514_v30  }
 0x1a5   :  { %v442_v21 = vpop.f32.mrf.mxu3 }
 0x1a6   :  { %v443_v23 = vadd.f32 %v442_v21, %v384_v32 }
 0x1a7   :  { %v425_v34 = vpop.f32.mrf.mxu1 }
 0x1a8   :  { %v534_v35 = vpack.c.bf16 %v443_v23, %v441_v33  ;;  %v426_v38 = vadd.f32 %v425_v34, %v349_v10 }
 0x1aa   :  { %550 = vst [vmem:[#allocation5 + $0x28] sm:$0xff] %v534_v35  }
 0x1ad   :  { %v445_v36 = vpop.f32.mrf.mxu3 }
 0x1ae   :  { %v446_v42 = vadd.f32 %v445_v36, %v389_v40 }
 0x1af   :  { %v427_v37 = vpop.f32.mrf.mxu1 }
 0x1b0   :  { %v428_v19 = vadd.f32 %v427_v37, %v354_v6 }
 0x1b2   :  { %v519_v17 = vpack.c.bf16 %v428_v19, %v426_v38 }
 0x1b4   :  { %547 = vst [vmem:[#allocation5 + $0x10] sm:$0xff] %v519_v17  }
 0x1b5   :  { %v447_v41 = vpop.f32.mrf.mxu3 }
 0x1b6   :  { %v448_v43 = vadd.f32 %v447_v41, %v394_v39 }
 0x1b7   :  { %v430_v44 = vpop.f32.mrf.mxu1 }
 0x1b8   :  { %v539_v45 = vpack.c.bf16 %v448_v43, %v446_v42  ;;  %v431_v48 = vadd.f32 %v430_v44, %v359_v7 }
 0x1ba   :  { %551 = vst [vmem:[#allocation5 + $0x30] sm:$0xff] %v539_v45  }
 0x1bd   :  { %v450_v46 = vpop.f32.mrf.mxu3 }
 0x1be   :  { %v451_v54 = vadd.f32 %v450_v46, %v399_v51 }
 0x1bf   :  { %v432_v47 = vpop.f32.mrf.mxu1 }
 0x1c0   :  { %v433_v49 = vadd.f32 %v432_v47, %v364_v25 }
 0x1c2   :  { %v524_v50 = vpack.c.bf16 %v433_v49, %v431_v48 }
 0x1c4   :  { %548 = vst [vmem:[#allocation5 + $0x18] sm:$0xff] %v524_v50  }
 0x1c5   :  { %v452_v53 = vpop.f32.mrf.mxu3 }
 0x1c6   :  { %v453_v55 = vadd.f32 %v452_v53, %v404_v52 }
 0x1c8   :  { %v544_v56 = vpack.c.bf16 %v453_v55, %v451_v54 }
 0x1ca   :  { %552 = vst [vmem:[#allocation5 + $0x38] sm:$0xff] %v544_v56  }
 0x1cb   :  { %499 = dma.vmem_to_hbm [thread:$0]  %s492_s17, 1024, %s494_s20, [#allocation4], %s636_s21, %s636_s21, %s637_s22  }
 0x1cc   :  { %629 = dma.done.wait [#allocation4], 1024  }
 0x1cd   :  { %630 = vsyncadd [#allocation4], 4294966272 }
 0x1ce   :  { %504 = vsyncpa [#allocation3], 1 }
 0x1cf   :  { %505 = vsyncpa [#allocation4], 1 }

</bundles_post_ra>
